<compile_context>
chip_gen: v5e
topology: v5e:2x2
jax: 0.10.0
libtpu: 0.0.40
codegen_flags: <defaults>
</compile_context>

<pallas_src>
import jax
import jax.numpy as jnp
from jax.experimental import pallas as pl
from jax.experimental.pallas import tpu as pltpu

# --- constants implied by the module (picked deterministically; not defined in source) ---
NUM_CLIMATES = 30
NUM_MONTHS = 12
NUM_STATES = 50
NUM_COUNTIES = 64
NUM_CITIES = 128
NUM_LOC = NUM_STATES + NUM_COUNTIES + NUM_CITIES  # 242

LANE = 128
SUBLANE = 8
NEG_INF = -1e30  # mask value for padded logit columns (softmax-safe in f32)

# Packed column layout for the fused first matmul: [climate | month | h1]
C_OFF = 0 * LANE            # climate logits, 30 real + 98 pad
M_OFF = 1 * LANE            # month logits,   12 real + 116 pad
H1_OFF = 2 * LANE           # MLP hidden-1,   512 real
H1_DIM = 512
PACK_A = H1_OFF + H1_DIM    # 768

# Packed column layout for MLP layer-3 output: [state | county | city]
S_OFF = 0 * LANE            # 50 real + 78 pad
CO_OFF = 1 * LANE           # 64 real + 64 pad
CI_OFF = 2 * LANE           # 128 real
PACK_LOC = 3 * LANE         # 384

# Packed output slab: climate | month | state | county | city, each 128 wide
SLAB = 5 * LANE             # 640


def _round_up(x, m):
    return ((x + m - 1) // m) * m


def _softmax_128(z):
    """Stable softmax over a 128-lane segment; pad columns carry -1e30 -> 0 mass."""
    m = jnp.max(z, axis=-1, keepdims=True)
    e = jnp.exp(z - m)
    s = jnp.sum(e, axis=-1, keepdims=True)
    r = pl.reciprocal(s, approx=True)   # EUP vrcp (free slot) ...
    r = r * (2.0 - s * r)               # ... + one Newton step for ~1e-7 rel error
    return e * r


def aux_geo_kernel(emb_ref,
                   wa_ref, ba_ref,        # fused climate|month|h1 weight/bias [H,768]
                   w2_ref, b2_ref,        # MLP layer 2 (512 -> 256)
                   w3_ref, b3_ref,        # MLP layer 3 packed (256 -> 384)
                   logits_ref, soft_ref):
    x = emb_ref[...]                                               # [TB, H] f32

    # One wide MXU matmul for all x-side heads.
    ya = jnp.dot(x, wa_ref[...], preferred_element_type=jnp.float32) + ba_ref[...]
    climate = ya[:, C_OFF:C_OFF + LANE]
    month = ya[:, M_OFF:M_OFF + LANE]
    h1 = jnp.maximum(ya[:, H1_OFF:H1_OFF + H1_DIM], 0.0)

    h2 = jnp.maximum(
        jnp.dot(h1, w2_ref[...], preferred_element_type=jnp.float32) + b2_ref[...], 0.0)
    loc = jnp.dot(h2, w3_ref[...], preferred_element_type=jnp.float32) + b3_ref[...]
    state = loc[:, S_OFF:S_OFF + LANE]
    county = loc[:, CO_OFF:CO_OFF + LANE]
    city = loc[:, CI_OFF:CI_OFF + LANE]

    # Lane-aligned, unmasked full-width stores into the packed output slabs.
    logits_ref[:, 0 * LANE:1 * LANE] = climate
    logits_ref[:, 1 * LANE:2 * LANE] = month
    logits_ref[:, 2 * LANE:3 * LANE] = state
    logits_ref[:, 3 * LANE:4 * LANE] = county
    logits_ref[:, 4 * LANE:5 * LANE] = city

    soft_ref[:, 0 * LANE:1 * LANE] = _softmax_128(climate)
    soft_ref[:, 1 * LANE:2 * LANE] = _softmax_128(month)
    soft_ref[:, 2 * LANE:3 * LANE] = _softmax_128(state)
    soft_ref[:, 3 * LANE:4 * LANE] = _softmax_128(county)
    soft_ref[:, 4 * LANE:5 * LANE] = _softmax_128(city)


def init_params(hidden_size, key):
    """Deterministic init matching PyTorch nn.Linear default (uniform(-1/sqrt(fan_in), ...))."""
    def linear(key, fan_in, fan_out):
        kw, kb = jax.random.split(key)
        lim = 1.0 / (fan_in ** 0.5)
        w = jax.random.uniform(kw, (fan_in, fan_out), jnp.float32, -lim, lim)
        b = jax.random.uniform(kb, (1, fan_out), jnp.float32, -lim, lim)
        return w, b

    keys = jax.random.split(key, 5)
    wc, bc = linear(keys[0], hidden_size, NUM_CLIMATES)
    wm, bm = linear(keys[1], hidden_size, NUM_MONTHS)
    w1, b1 = linear(keys[2], hidden_size, 512)
    w2, b2 = linear(keys[3], 512, 256)
    w3, b3 = linear(keys[4], 256, NUM_LOC)
    return dict(wc=wc, bc=bc, wm=wm, bm=bm, w1=w1, b1=b1, w2=w2, b2=b2, w3=w3, b3=b3)


def pack_params(params):
    """Pack weights into 128-lane-aligned column groups (done once, outside the kernel)."""
    H = params["wc"].shape[0]

    wa = jnp.zeros((H, PACK_A), jnp.float32)
    wa = wa.at[:, C_OFF:C_OFF + NUM_CLIMATES].set(params["wc"])
    wa = wa.at[:, M_OFF:M_OFF + NUM_MONTHS].set(params["wm"])
    wa = wa.at[:, H1_OFF:H1_OFF + H1_DIM].set(params["w1"])

    ba = jnp.full((1, PACK_A), NEG_INF, jnp.float32)
    ba = ba.at[:, C_OFF:C_OFF + NUM_CLIMATES].set(params["bc"])
    ba = ba.at[:, M_OFF:M_OFF + NUM_MONTHS].set(params["bm"])
    ba = ba.at[:, H1_OFF:H1_OFF + H1_DIM].set(params["b1"])

    w3 = params["w3"]
    b3 = params["b3"]
    w3p = jnp.zeros((512 // 2, PACK_LOC), jnp.float32)  # (256, 384)
    w3p = w3p.at[:, S_OFF:S_OFF + NUM_STATES].set(w3[:, :NUM_STATES])
    w3p = w3p.at[:, CO_OFF:CO_OFF + NUM_COUNTIES].set(
        w3[:, NUM_STATES:NUM_STATES + NUM_COUNTIES])
    w3p = w3p.at[:, CI_OFF:CI_OFF + NUM_CITIES].set(w3[:, NUM_STATES + NUM_COUNTIES:])

    b3p = jnp.full((1, PACK_LOC), NEG_INF, jnp.float32)
    b3p = b3p.at[:, S_OFF:S_OFF + NUM_STATES].set(b3[:, :NUM_STATES])
    b3p = b3p.at[:, CO_OFF:CO_OFF + NUM_COUNTIES].set(
        b3[:, NUM_STATES:NUM_STATES + NUM_COUNTIES])
    b3p = b3p.at[:, CI_OFF:CI_OFF + NUM_CITIES].set(b3[:, NUM_STATES + NUM_COUNTIES:])

    return dict(wa=wa, ba=ba, w2=params["w2"], b2=params["b2"], w3p=w3p, b3p=b3p)


def auxiliary_geo_forward(embeddings, packed, *, batch_tile=128):
    B, H = embeddings.shape

    # Pad batch to at least one sublane group and to the batch tile.
    tb = min(batch_tile, _round_up(B, SUBLANE))
    bp = _round_up(B, tb)
    x = embeddings if bp == B else jnp.pad(embeddings, ((0, bp - B), (0, 0)))
    nb = bp // tb

    out_shape = (
        jax.ShapeDtypeStruct((bp, SLAB), jnp.float32),   # packed raw logits
        jax.ShapeDtypeStruct((bp, SLAB), jnp.float32),   # packed softmax
    )

    const = lambda i: (0, 0)  # weights: constant index map -> stay VMEM-resident
    in_specs = [
        pl.BlockSpec((tb, H), lambda i: (i, 0)),
        pl.BlockSpec((H, PACK_A), const),
        pl.BlockSpec((1, PACK_A), const),
        pl.BlockSpec((512, 256), const),
        pl.BlockSpec((1, 256), const),
        pl.BlockSpec((256, PACK_LOC), const),
        pl.BlockSpec((1, PACK_LOC), const),
    ]
    out_specs = (
        pl.BlockSpec((tb, SLAB), lambda i: (i, 0)),
        pl.BlockSpec((tb, SLAB), lambda i: (i, 0)),
    )

    logits, soft = pl.pallas_call(
        aux_geo_kernel,
        out_shape=out_shape,
        grid=(nb,),
        in_specs=in_specs,
        out_specs=out_specs,
        compiler_params=pltpu.CompilerParams(
            dimension_semantics=("parallel",),
            vmem_limit_bytes=32 << 20,
        ),
    )(x, packed["wa"], packed["ba"], packed["w2"], packed["b2"],
      packed["w3p"], packed["b3p"])

    logits = logits[:B]
    soft = soft[:B]

    climate = logits[:, 0 * LANE:0 * LANE + NUM_CLIMATES]
    month = logits[:, 1 * LANE:1 * LANE + NUM_MONTHS]
    state = logits[:, 2 * LANE:2 * LANE + NUM_STATES]
    county = logits[:, 3 * LANE:3 * LANE + NUM_COUNTIES]
    city = logits[:, 4 * LANE:4 * LANE + NUM_CITIES]

    # Combined-features concat done in XLA (lane-unaligned seams stay out of the kernel).
    comb = jnp.concatenate(
        [embeddings,
         soft[:, 0 * LANE:0 * LANE + NUM_CLIMATES],
         soft[:, 1 * LANE:1 * LANE + NUM_MONTHS],
         soft[:, 2 * LANE:2 * LANE + NUM_STATES],
         soft[:, 3 * LANE:3 * LANE + NUM_COUNTIES],
         soft[:, 4 * LANE:4 * LANE + NUM_CITIES]],
        axis=-1,
    )
    return climate, month, state, county, city, comb


def auxiliary_geo_reference(embeddings, params):
    """Pure-JAX reference mirroring the PyTorch forward."""
    hi = jax.lax.Precision.HIGHEST
    x = embeddings
    climate = jnp.dot(x, params["wc"], precision=hi) + params["bc"]
    month = jnp.dot(x, params["wm"], precision=hi) + params["bm"]
    h1 = jax.nn.relu(jnp.dot(x, params["w1"], precision=hi) + params["b1"])
    h2 = jax.nn.relu(jnp.dot(h1, params["w2"], precision=hi) + params["b2"])
    loc = jnp.dot(h2, params["w3"], precision=hi) + params["b3"]
    state = loc[:, :NUM_STATES]
    county = loc[:, NUM_STATES:NUM_STATES + NUM_COUNTIES]
    city = loc[:, NUM_STATES + NUM_COUNTIES:]
    comb = jnp.concatenate(
        [x, jax.nn.softmax(climate, -1), jax.nn.softmax(month, -1),
         jax.nn.softmax(state, -1), jax.nn.softmax(county, -1),
         jax.nn.softmax(city, -1)], axis=-1)
    return climate, month, state, county, city, comb


if __name__ == "__main__":
    B, H = 2, 32
    key = jax.random.PRNGKey(0)
    k_emb, k_par = jax.random.split(key)
    embeddings = jax.random.normal(k_emb, (B, H), jnp.float32)
    params = init_params(H, k_par)
    packed = pack_params(params)

    outs = auxiliary_geo_forward(embeddings, packed)
    outs = jax.block_until_ready(outs)

    refs = auxiliary_geo_reference(embeddings, params)
    names = ("climate", "month", "state", "county", "city", "combined")
    for name, o, r in zip(names, outs, refs):
        assert o.shape == r.shape and o.dtype == jnp.float32, name
        assert jnp.allclose(o, r, atol=1e-4, rtol=1e-4), f"mismatch vs reference: {name}"

    print("KERNEL_OK")
</pallas_src>

<mosaic_0001>
module attributes {stable_mosaic.version = 11 : i64} {
  func.func @aux_geo_kernel(%arg0: i32, %arg1: memref<8x32xf32, #tpu.memory_space<vmem>>, %arg2: memref<32x768xf32, #tpu.memory_space<vmem>>, %arg3: memref<1x768xf32, #tpu.memory_space<vmem>>, %arg4: memref<512x256xf32, #tpu.memory_space<vmem>>, %arg5: memref<1x256xf32, #tpu.memory_space<vmem>>, %arg6: memref<256x384xf32, #tpu.memory_space<vmem>>, %arg7: memref<1x384xf32, #tpu.memory_space<vmem>>, %arg8: memref<8x640xf32, #tpu.memory_space<vmem>>, %arg9: memref<8x640xf32, #tpu.memory_space<vmem>>) attributes {dimension_semantics = [#tpu.dimension_semantics<parallel>], iteration_bounds = array<i64: 1>, scalar_prefetch = 0 : i64, scratch_operands = 0 : i64, tpu.core_type = #tpu.core_type<tc>, window_params = [{transform_indices = @transform_0, window_bounds = array<i64: 8, 32>}, {pipeline_mode = #tpu.pipeline_mode<synchronous>, transform_indices = @transform_1, window_bounds = array<i64: 32, 768>}, {pipeline_mode = #tpu.pipeline_mode<synchronous>, transform_indices = @transform_2, window_bounds = array<i64: 1, 768>}, {pipeline_mode = #tpu.pipeline_mode<synchronous>, transform_indices = @transform_3, window_bounds = array<i64: 512, 256>}, {pipeline_mode = #tpu.pipeline_mode<synchronous>, transform_indices = @transform_4, window_bounds = array<i64: 1, 256>}, {pipeline_mode = #tpu.pipeline_mode<synchronous>, transform_indices = @transform_5, window_bounds = array<i64: 256, 384>}, {pipeline_mode = #tpu.pipeline_mode<synchronous>, transform_indices = @transform_6, window_bounds = array<i64: 1, 384>}, {transform_indices = @transform_7, window_bounds = array<i64: 8, 640>}, {transform_indices = @transform_8, window_bounds = array<i64: 8, 640>}]} {
    %c0 = arith.constant 0 : index
    %c0_0 = arith.constant 0 : index
    %0 = vector.load %arg1[%c0, %c0_0] : memref<8x32xf32, #tpu.memory_space<vmem>>, vector<8x32xf32>
    %c0_1 = arith.constant 0 : index
    %c0_2 = arith.constant 0 : index
    %1 = vector.load %arg2[%c0_1, %c0_2] : memref<32x768xf32, #tpu.memory_space<vmem>>, vector<32x768xf32>
    %cst = arith.constant dense<0.000000e+00> : vector<8x768xf32>
    %2 = tpu.matmul %0, %1, %cst {dimension_numbers = #tpu.dot_dimension_numbers<[1], [0], [0], [1], [0, 0, 1, 1], [], []>} : vector<8x32xf32>, vector<32x768xf32>, vector<8x768xf32> -> vector<8x768xf32>
    %c0_3 = arith.constant 0 : index
    %c0_4 = arith.constant 0 : index
    %3 = vector.load %arg3[%c0_3, %c0_4] : memref<1x768xf32, #tpu.memory_space<vmem>>, vector<1x768xf32>
    %4 = vector.broadcast %3 : vector<1x768xf32> to vector<8x768xf32>
    %5 = arith.addf %2, %4 : vector<8x768xf32>
    %6 = vector.extract_strided_slice %5 {offsets = [0, 0], sizes = [8, 128], strides = [1, 1]} : vector<8x768xf32> to vector<8x128xf32>
    %7 = vector.extract_strided_slice %5 {offsets = [0, 128], sizes = [8, 128], strides = [1, 1]} : vector<8x768xf32> to vector<8x128xf32>
    %8 = vector.extract_strided_slice %5 {offsets = [0, 256], sizes = [8, 512], strides = [1, 1]} : vector<8x768xf32> to vector<8x512xf32>
    %cst_5 = arith.constant 0.000000e+00 : f32
    %9 = vector.broadcast %cst_5 : f32 to vector<8x512xf32>
    %10 = arith.maximumf %8, %9 : vector<8x512xf32>
    %c0_6 = arith.constant 0 : index
    %c0_7 = arith.constant 0 : index
    %11 = vector.load %arg4[%c0_6, %c0_7] : memref<512x256xf32, #tpu.memory_space<vmem>>, vector<512x256xf32>
    %cst_8 = arith.constant dense<0.000000e+00> : vector<8x256xf32>
    %12 = tpu.matmul %10, %11, %cst_8 {dimension_numbers = #tpu.dot_dimension_numbers<[1], [0], [0], [1], [0, 0, 1, 1], [], []>} : vector<8x512xf32>, vector<512x256xf32>, vector<8x256xf32> -> vector<8x256xf32>
    %c0_9 = arith.constant 0 : index
    %c0_10 = arith.constant 0 : index
    %13 = vector.load %arg5[%c0_9, %c0_10] : memref<1x256xf32, #tpu.memory_space<vmem>>, vector<1x256xf32>
    %14 = vector.broadcast %13 : vector<1x256xf32> to vector<8x256xf32>
    %15 = arith.addf %12, %14 : vector<8x256xf32>
    %cst_11 = arith.constant 0.000000e+00 : f32
    %16 = vector.broadcast %cst_11 : f32 to vector<8x256xf32>
    %17 = arith.maximumf %15, %16 : vector<8x256xf32>
    %c0_12 = arith.constant 0 : index
    %c0_13 = arith.constant 0 : index
    %18 = vector.load %arg6[%c0_12, %c0_13] : memref<256x384xf32, #tpu.memory_space<vmem>>, vector<256x384xf32>
    %cst_14 = arith.constant dense<0.000000e+00> : vector<8x384xf32>
    %19 = tpu.matmul %17, %18, %cst_14 {dimension_numbers = #tpu.dot_dimension_numbers<[1], [0], [0], [1], [0, 0, 1, 1], [], []>} : vector<8x256xf32>, vector<256x384xf32>, vector<8x384xf32> -> vector<8x384xf32>
    %c0_15 = arith.constant 0 : index
    %c0_16 = arith.constant 0 : index
    %20 = vector.load %arg7[%c0_15, %c0_16] : memref<1x384xf32, #tpu.memory_space<vmem>>, vector<1x384xf32>
    %21 = vector.broadcast %20 : vector<1x384xf32> to vector<8x384xf32>
    %22 = arith.addf %19, %21 : vector<8x384xf32>
    %23 = vector.extract_strided_slice %22 {offsets = [0, 0], sizes = [8, 128], strides = [1, 1]} : vector<8x384xf32> to vector<8x128xf32>
    %24 = vector.extract_strided_slice %22 {offsets = [0, 128], sizes = [8, 128], strides = [1, 1]} : vector<8x384xf32> to vector<8x128xf32>
    %25 = vector.extract_strided_slice %22 {offsets = [0, 256], sizes = [8, 128], strides = [1, 1]} : vector<8x384xf32> to vector<8x128xf32>
    %c0_17 = arith.constant 0 : index
    %c0_18 = arith.constant 0 : index
    %26 = vector.load %arg8[%c0_17, %c0_18] : memref<8x640xf32, #tpu.memory_space<vmem>>, vector<8x128xf32>
    tpu.vector_store %arg8[%c0_17, %c0_18], %6 {strides = array<i32>} : memref<8x640xf32, #tpu.memory_space<vmem>>, vector<8x128xf32>,
    %c0_19 = arith.constant 0 : index
    %c128 = arith.constant 128 : index
    %27 = vector.load %arg8[%c0_19, %c128] : memref<8x640xf32, #tpu.memory_space<vmem>>, vector<8x128xf32>
    tpu.vector_store %arg8[%c0_19, %c128], %7 {strides = array<i32>} : memref<8x640xf32, #tpu.memory_space<vmem>>, vector<8x128xf32>,
    %c0_20 = arith.constant 0 : index
    %c256 = arith.constant 256 : index
    %28 = vector.load %arg8[%c0_20, %c256] : memref<8x640xf32, #tpu.memory_space<vmem>>, vector<8x128xf32>
    tpu.vector_store %arg8[%c0_20, %c256], %23 {strides = array<i32>} : memref<8x640xf32, #tpu.memory_space<vmem>>, vector<8x128xf32>,
    %c0_21 = arith.constant 0 : index
    %c384 = arith.constant 384 : index
    %29 = vector.load %arg8[%c0_21, %c384] : memref<8x640xf32, #tpu.memory_space<vmem>>, vector<8x128xf32>
    tpu.vector_store %arg8[%c0_21, %c384], %24 {strides = array<i32>} : memref<8x640xf32, #tpu.memory_space<vmem>>, vector<8x128xf32>,
    %c0_22 = arith.constant 0 : index
    %c512 = arith.constant 512 : index
    %30 = vector.load %arg8[%c0_22, %c512] : memref<8x640xf32, #tpu.memory_space<vmem>>, vector<8x128xf32>
    tpu.vector_store %arg8[%c0_22, %c512], %25 {strides = array<i32>} : memref<8x640xf32, #tpu.memory_space<vmem>>, vector<8x128xf32>,
    %cst_23 = arith.constant dense<0xFF800000> : vector<8xf32>
    %31 = vector.multi_reduction <maximumf>, %6, %cst_23 [1] : vector<8x128xf32> to vector<8xf32>
    %32 = vector.shape_cast %31 : vector<8xf32> to vector<8x1xf32>
    %33 = vector.broadcast %32 : vector<8x1xf32> to vector<8x128xf32>
    %34 = arith.subf %6, %33 : vector<8x128xf32>
    %35 = math.exp %34 : vector<8x128xf32>
    %cst_24 = arith.constant dense<0.000000e+00> : vector<8xf32>
    %36 = vector.multi_reduction <add>, %35, %cst_24 [1] : vector<8x128xf32> to vector<8xf32>
    %37 = vector.shape_cast %36 : vector<8xf32> to vector<8x1xf32>
    %38 = tpu.reciprocal %37 {approx = true} : vector<8x1xf32> -> vector<8x1xf32>
    %39 = arith.mulf %37, %38 : vector<8x1xf32>
    %cst_25 = arith.constant 2.000000e+00 : f32
    %40 = vector.broadcast %cst_25 : f32 to vector<8x1xf32>
    %41 = arith.subf %40, %39 : vector<8x1xf32>
    %42 = arith.mulf %38, %41 : vector<8x1xf32>
    %43 = vector.broadcast %42 : vector<8x1xf32> to vector<8x128xf32>
    %44 = arith.mulf %35, %43 : vector<8x128xf32>
    %c0_26 = arith.constant 0 : index
    %c0_27 = arith.constant 0 : index
    %45 = vector.load %arg9[%c0_26, %c0_27] : memref<8x640xf32, #tpu.memory_space<vmem>>, vector<8x128xf32>
    tpu.vector_store %arg9[%c0_26, %c0_27], %44 {strides = array<i32>} : memref<8x640xf32, #tpu.memory_space<vmem>>, vector<8x128xf32>,
    %cst_28 = arith.constant dense<0xFF800000> : vector<8xf32>
    %46 = vector.multi_reduction <maximumf>, %7, %cst_28 [1] : vector<8x128xf32> to vector<8xf32>
    %47 = vector.shape_cast %46 : vector<8xf32> to vector<8x1xf32>
    %48 = vector.broadcast %47 : vector<8x1xf32> to vector<8x128xf32>
    %49 = arith.subf %7, %48 : vector<8x128xf32>
    %50 = math.exp %49 : vector<8x128xf32>
    %cst_29 = arith.constant dense<0.000000e+00> : vector<8xf32>
    %51 = vector.multi_reduction <add>, %50, %cst_29 [1] : vector<8x128xf32> to vector<8xf32>
    %52 = vector.shape_cast %51 : vector<8xf32> to vector<8x1xf32>
    %53 = tpu.reciprocal %52 {approx = true} : vector<8x1xf32> -> vector<8x1xf32>
    %54 = arith.mulf %52, %53 : vector<8x1xf32>
    %cst_30 = arith.constant 2.000000e+00 : f32
    %55 = vector.broadcast %cst_30 : f32 to vector<8x1xf32>
    %56 = arith.subf %55, %54 : vector<8x1xf32>
    %57 = arith.mulf %53, %56 : vector<8x1xf32>
    %58 = vector.broadcast %57 : vector<8x1xf32> to vector<8x128xf32>
    %59 = arith.mulf %50, %58 : vector<8x128xf32>
    %c0_31 = arith.constant 0 : index
    %c128_32 = arith.constant 128 : index
    %60 = vector.load %arg9[%c0_31, %c128_32] : memref<8x640xf32, #tpu.memory_space<vmem>>, vector<8x128xf32>
    tpu.vector_store %arg9[%c0_31, %c128_32], %59 {strides = array<i32>} : memref<8x640xf32, #tpu.memory_space<vmem>>, vector<8x128xf32>,
    %cst_33 = arith.constant dense<0xFF800000> : vector<8xf32>
    %61 = vector.multi_reduction <maximumf>, %23, %cst_33 [1] : vector<8x128xf32> to vector<8xf32>
    %62 = vector.shape_cast %61 : vector<8xf32> to vector<8x1xf32>
    %63 = vector.broadcast %62 : vector<8x1xf32> to vector<8x128xf32>
    %64 = arith.subf %23, %63 : vector<8x128xf32>
    %65 = math.exp %64 : vector<8x128xf32>
    %cst_34 = arith.constant dense<0.000000e+00> : vector<8xf32>
    %66 = vector.multi_reduction <add>, %65, %cst_34 [1] : vector<8x128xf32> to vector<8xf32>
    %67 = vector.shape_cast %66 : vector<8xf32> to vector<8x1xf32>
    %68 = tpu.reciprocal %67 {approx = true} : vector<8x1xf32> -> vector<8x1xf32>
    %69 = arith.mulf %67, %68 : vector<8x1xf32>
    %cst_35 = arith.constant 2.000000e+00 : f32
    %70 = vector.broadcast %cst_35 : f32 to vector<8x1xf32>
    %71 = arith.subf %70, %69 : vector<8x1xf32>
    %72 = arith.mulf %68, %71 : vector<8x1xf32>
    %73 = vector.broadcast %72 : vector<8x1xf32> to vector<8x128xf32>
    %74 = arith.mulf %65, %73 : vector<8x128xf32>
    %c0_36 = arith.constant 0 : index
    %c256_37 = arith.constant 256 : index
    %75 = vector.load %arg9[%c0_36, %c256_37] : memref<8x640xf32, #tpu.memory_space<vmem>>, vector<8x128xf32>
    tpu.vector_store %arg9[%c0_36, %c256_37], %74 {strides = array<i32>} : memref<8x640xf32, #tpu.memory_space<vmem>>, vector<8x128xf32>,
    %cst_38 = arith.constant dense<0xFF800000> : vector<8xf32>
    %76 = vector.multi_reduction <maximumf>, %24, %cst_38 [1] : vector<8x128xf32> to vector<8xf32>
    %77 = vector.shape_cast %76 : vector<8xf32> to vector<8x1xf32>
    %78 = vector.broadcast %77 : vector<8x1xf32> to vector<8x128xf32>
    %79 = arith.subf %24, %78 : vector<8x128xf32>
    %80 = math.exp %79 : vector<8x128xf32>
    %cst_39 = arith.constant dense<0.000000e+00> : vector<8xf32>
    %81 = vector.multi_reduction <add>, %80, %cst_39 [1] : vector<8x128xf32> to vector<8xf32>
    %82 = vector.shape_cast %81 : vector<8xf32> to vector<8x1xf32>
    %83 = tpu.reciprocal %82 {approx = true} : vector<8x1xf32> -> vector<8x1xf32>
    %84 = arith.mulf %82, %83 : vector<8x1xf32>
    %cst_40 = arith.constant 2.000000e+00 : f32
    %85 = vector.broadcast %cst_40 : f32 to vector<8x1xf32>
    %86 = arith.subf %85, %84 : vector<8x1xf32>
    %87 = arith.mulf %83, %86 : vector<8x1xf32>
    %88 = vector.broadcast %87 : vector<8x1xf32> to vector<8x128xf32>
    %89 = arith.mulf %80, %88 : vector<8x128xf32>
    %c0_41 = arith.constant 0 : index
    %c384_42 = arith.constant 384 : index
    %90 = vector.load %arg9[%c0_41, %c384_42] : memref<8x640xf32, #tpu.memory_space<vmem>>, vector<8x128xf32>
    tpu.vector_store %arg9[%c0_41, %c384_42], %89 {strides = array<i32>} : memref<8x640xf32, #tpu.memory_space<vmem>>, vector<8x128xf32>,
    %cst_43 = arith.constant dense<0xFF800000> : vector<8xf32>
    %91 = vector.multi_reduction <maximumf>, %25, %cst_43 [1] : vector<8x128xf32> to vector<8xf32>
    %92 = vector.shape_cast %91 : vector<8xf32> to vector<8x1xf32>
    %93 = vector.broadcast %92 : vector<8x1xf32> to vector<8x128xf32>
    %94 = arith.subf %25, %93 : vector<8x128xf32>
    %95 = math.exp %94 : vector<8x128xf32>
    %cst_44 = arith.constant dense<0.000000e+00> : vector<8xf32>
    %96 = vector.multi_reduction <add>, %95, %cst_44 [1] : vector<8x128xf32> to vector<8xf32>
    %97 = vector.shape_cast %96 : vector<8xf32> to vector<8x1xf32>
    %98 = tpu.reciprocal %97 {approx = true} : vector<8x1xf32> -> vector<8x1xf32>
    %99 = arith.mulf %97, %98 : vector<8x1xf32>
    %cst_45 = arith.constant 2.000000e+00 : f32
    %100 = vector.broadcast %cst_45 : f32 to vector<8x1xf32>
    %101 = arith.subf %100, %99 : vector<8x1xf32>
    %102 = arith.mulf %98, %101 : vector<8x1xf32>
    %103 = vector.broadcast %102 : vector<8x1xf32> to vector<8x128xf32>
    %104 = arith.mulf %95, %103 : vector<8x128xf32>
    %c0_46 = arith.constant 0 : index
    %c512_47 = arith.constant 512 : index
    %105 = vector.load %arg9[%c0_46, %c512_47] : memref<8x640xf32, #tpu.memory_space<vmem>>, vector<8x128xf32>
    tpu.vector_store %arg9[%c0_46, %c512_47], %104 {strides = array<i32>} : memref<8x640xf32, #tpu.memory_space<vmem>>, vector<8x128xf32>,
    return
  }
  func.func @transform_0(%arg0: i32) -> (i32, i32) {
    %c0_i32 = arith.constant 0 : i32
    %c0_i32_0 = arith.constant 0 : i32
    return %arg0, %c0_i32 : i32, i32
  }
  func.func @transform_1(%arg0: i32) -> (i32, i32) {
    %c0_i32 = arith.constant 0 : i32
    %c0_i32_0 = arith.constant 0 : i32
    %c0_i32_1 = arith.constant 0 : i32
    return %c0_i32, %c0_i32_0 : i32, i32
  }
  func.func @transform_2(%arg0: i32) -> (i32, i32) {
    %c0_i32 = arith.constant 0 : i32
    %c0_i32_0 = arith.constant 0 : i32
    %c0_i32_1 = arith.constant 0 : i32
    return %c0_i32, %c0_i32_0 : i32, i32
  }
  func.func @transform_3(%arg0: i32) -> (i32, i32) {
    %c0_i32 = arith.constant 0 : i32
    %c0_i32_0 = arith.constant 0 : i32
    %c0_i32_1 = arith.constant 0 : i32
    return %c0_i32, %c0_i32_0 : i32, i32
  }
  func.func @transform_4(%arg0: i32) -> (i32, i32) {
    %c0_i32 = arith.constant 0 : i32
    %c0_i32_0 = arith.constant 0 : i32
    %c0_i32_1 = arith.constant 0 : i32
    return %c0_i32, %c0_i32_0 : i32, i32
  }
  func.func @transform_5(%arg0: i32) -> (i32, i32) {
    %c0_i32 = arith.constant 0 : i32
    %c0_i32_0 = arith.constant 0 : i32
    %c0_i32_1 = arith.constant 0 : i32
    return %c0_i32, %c0_i32_0 : i32, i32
  }
  func.func @transform_6(%arg0: i32) -> (i32, i32) {
    %c0_i32 = arith.constant 0 : i32
    %c0_i32_0 = arith.constant 0 : i32
    %c0_i32_1 = arith.constant 0 : i32
    return %c0_i32, %c0_i32_0 : i32, i32
  }
  func.func @transform_7(%arg0: i32) -> (i32, i32) {
    %c0_i32 = arith.constant 0 : i32
    %c0_i32_0 = arith.constant 0 : i32
    return %arg0, %c0_i32 : i32, i32
  }
  func.func @transform_8(%arg0: i32) -> (i32, i32) {
    %c0_i32 = arith.constant 0 : i32
    %c0_i32_0 = arith.constant 0 : i32
    return %arg0, %c0_i32 : i32, i32
  }
}

</mosaic_0001>

<bundles_post_ra>
// kernel: tpu_custom_call.1
= control target key start
LH: loop header
LB: loop body
LE: loop exit
PB: predicated region body
PF: predicated region fallthrough
CT: control target
= control target key end

     0   :  { %14 = vsyncpa [#allocation3], 0  ;;  %s1225_s0 = inlined_call_operand.hbm [shape: f32[8,32], index: 0, kind: input, shape index: {}]   ;;  %s1226_s1 = inlined_call_operand.hbm [shape: f32[32,768], index: 1, kind: input, shape index: {}]   ;;  %s1227_s2 = inlined_call_operand.hbm [shape: f32[1,768], index: 2, kind: input, shape index: {}]   ;;  %s1228_s3 = inlined_call_operand.hbm [shape: f32[512,256], index: 3, kind: input, shape index: {}]   ;;  %s1229_s4 = inlined_call_operand.vmem [shape: f32[1,256], index: 4, kind: input, shape index: {}]   ;;  %s1230_s5 = inlined_call_operand.hbm [shape: f32[256,384], index: 5, kind: input, shape index: {}]   ;;  %s1231_s6 = inlined_call_operand.vmem [shape: f32[1,384], index: 6, kind: input, shape index: {}]   ;;  %s1232_s7 = inlined_call_operand.hbm [shape: f32[8,640], index: 7, kind: output, shape index: {0}]   ;;  %s1233_s8 = inlined_call_operand.hbm [shape: f32[8,640], index: 8, kind: output, shape index: {1}]  }
   0x1   :  { %15 = vsyncpa [#allocation6], 0 }
   0x2   :  { %16 = vsyncpa [#allocation9], 0 }
   0x3   :  { %17 = vsyncpa [#allocation4], 0  ;;  %s34_s29 = sshll.u32 %s1226_s1, 4  ;;  %s35_s29 = int_to_ptr.hbm [resolvable:$true] %s34_s29 }
   0x4   :  { %18 = vsyncpa [#allocation13], 0  ;;  %s1113_s30 = smov [#allocation5]   ;;  %s58_s12 = sshll.u32 %s1228_s3, 4  ;;  %s59_s12 = int_to_ptr.hbm [resolvable:$true] %s58_s12 }
   0x5   :  { %s36_s9 = sshll.u32 %s1113_s30, 4  ;;  %s1114_s13 = smov 768   ;;  %s37_s9 = int_to_ptr.vmem [resolvable:$true] %s36_s9 }
   0x6   :  { %s1115_s14 = smov 48   ;;  %s1116_s15 = smov [#allocation8]  }
   0x7   :  { %42 = dma.hbm_to_vmem [thread:$0]  %s35_s29, 3072, %s37_s9, [#allocation6], %s1114_s13, %s1114_s13, %s1115_s14  }
   0x8   :  { %s60_s16 = sshll.u32 %s1116_s15, 4  ;;  %s1117_s17 = smov 256   ;;  %s61_s16 = int_to_ptr.vmem [resolvable:$true] %s60_s16 }
   0x9   :  { %s1118_s18 = smov 16   ;;  %s24_s20 = sshll.u32 %s1225_s0, 4  ;;  %s25_s20 = int_to_ptr.hbm [resolvable:$true] %s24_s20 }
   0xa   :  { %66 = dma.hbm_to_vmem [thread:$0]  %s59_s12, 16384, %s61_s16, [#allocation9], %s1117_s17, %s1117_s17, %s1118_s18  }
   0xb   :  { %s1119_s21 = smov [#allocation2]   ;;  %s48_s24 = sshll.u32 %s1227_s2, 4  ;;  %s49_s24 = int_to_ptr.hbm [resolvable:$true] %s48_s24 }
   0xc   :  { %s26_s22 = sshll.u32 %s1119_s21, 4  ;;  %s1120_s25 = smov [#allocation7]   ;;  %s27_s22 = int_to_ptr.vmem [resolvable:$true] %s26_s22 }
   0xd   :  { %29 = dma.hbm_to_vmem [thread:$0]  %s25_s20, 128, %s27_s22, [#allocation3]  }
   0xe   :  { %s50_s26 = sshll.u32 %s1120_s25, 4  ;;  %s73_s29 = sshll.u32 %s1230_s5, 4  ;;  %s51_s26 = int_to_ptr.vmem [resolvable:$true] %s50_s26  ;;  %s74_s29 = int_to_ptr.hbm [resolvable:$true] %s73_s29 }
   0xf   :  { %53 = dma.hbm_to_vmem [thread:$0]  %s49_s24, 96, %s51_s26, [#allocation6]  }
  0x10   :  { %s1121_s0 = smov [#allocation10]   ;;  %s1122_s9 = smov 384  }
  0x11   :  { %s75_s30 = sshll.u32 %s1121_s0, 4  ;;  %s1123_s10 = smov 24   ;;  %s76_s30 = int_to_ptr.vmem [resolvable:$true] %s75_s30 }
  0x12   :  { %81 = dma.hbm_to_vmem [thread:$0]  %s74_s29, 12288, %s76_s30, [#allocation9], %s1122_s9, %s1122_s9, %s1123_s10  }
  0x13   :  { %1103 = dma.done.wait [#allocation3], 128  }
  0x14   :  { %1104 = vsyncadd [#allocation3], 4294967168 }
  0x15   :  { %1105 = dma.done.wait [#allocation6], 3168  }
  0x16   :  { %1106 = vsyncadd [#allocation6], 4294964128 }
  0x17   :  { %1107 = dma.done.wait [#allocation9], 28672  }
  0x18   :  { %1108 = vsyncadd [#allocation9], 4294938624  ;;  %v123_v0 = vld [vmem:[#allocation5 + $0x90] sm:$0xff]  ;;  %v124_v1 = vld [vmem:[#allocation5 + $0x98] sm:$0xff]  ;;  %vm143_vm0 = vcmask 261120   ;;  %s868_s15 = sshll.u32 %s1232_s7, 4  ;;  %s869_s15 = int_to_ptr.hbm [resolvable:$true] %s868_s15 }
  0x19   :  { %v117_v2 = vld [vmem:[#allocation5 + $0x60] sm:$0xff]  ;;  %159 = vmatpush.msra.mxu0 %v123_v0  ;;  %179 = vmatpush.msra.mxu1 %v124_v1  ;;  %v118_v3 = vld [vmem:[#allocation5 + $0x68] sm:$0xff]  ;;  %v111_v4 = vld [vmem:[#allocation5 + $0x30] sm:$0xff]  ;;  %s1125_s7 = smov [#allocation12]   ;;  %s879_s1 = sshll.u32 %s1233_s8, 4  ;;  %s880_s1 = int_to_ptr.hbm [resolvable:$true] %s879_s1 }
  0x1a   :  { %v112_v5 = vld [vmem:[#allocation5 + $0x38] sm:$0xff]  ;;  %v105_v6 = vld [vmem:[#allocation5] sm:$0xff]  ;;  %v106_v7 = vld [vmem:[#allocation5 + $0x8] sm:$0xff]  ;;  %s877_s16 = sshll.u32 %s1125_s7, 4  ;;  %s878_s16 = int_to_ptr.vmem [resolvable:$true] %s877_s16 }
  0x1b   :  { %160 = vmatpush.msra.mxu0 %v117_v2  ;;  %180 = vmatpush.msra.mxu1 %v118_v3  ;;  %v1186_v8 = vld [vmem:[#allocation2] sm:$0xff]  ;;  %v125_v9 = vld [vmem:[#allocation5 + $0xa0] sm:$0xff]  ;;  %v126_v10 = vld [vmem:[#allocation5 + $0xa8] sm:$0xff] }
  0x1c   :  { %v119_v11 = vld [vmem:[#allocation5 + $0x70] sm:$0xff]  ;;  %v120_v12 = vld [vmem:[#allocation5 + $0x78] sm:$0xff]  ;;  %v299_v15 = vld [vmem:[#allocation8 + $0xe0] sm:$0xff] }
  0x1d   :  { %161 = vmatpush.msra.mxu0 %v111_v4  ;;  %181 = vmatpush.msra.mxu1 %v112_v5  ;;  %v301_v13 = vld [vmem:[#allocation8 + $0xf0] sm:$0xff]  ;;  %v331_v16 = vld [vmem:[#allocation8 + $0x1e0] sm:$0xff] }
  0x1e   :  { %v333_v14 = vld [vmem:[#allocation8 + $0x1f0] sm:$0xff]  ;;  %v113_v17 = vld [vmem:[#allocation5 + $0x40] sm:$0xff]  ;;  %v114_v18 = vld [vmem:[#allocation5 + $0x48] sm:$0xff]  ;;  %405 = vmatpush.msra.mxu2 %v301_v13 }
  0x1f   :  { %162 = vmatpush.msra.mxu0 %v105_v6  ;;  %182 = vmatpush.msra.mxu1 %v106_v7  ;;  %v297_v19 = vld [vmem:[#allocation8 + $0xd0] sm:$0xff]  ;;  %v295_v25 = vld [vmem:[#allocation8 + $0xc0] sm:$0xff] }
  0x20   :  { %896 = vmatmul.msk.f32.vlgmr.msra.gmra.mxu0 %vm143_vm0, %v1186_v8  ;;  %897 = vmatmul.msk.f32.vlgmr.msra.gmra.mxu1 %vm143_vm0, %v1186_v8  ;;  %v329_v20 = vld [vmem:[#allocation8 + $0x1d0] sm:$0xff]  ;;  %v327_v26 = vld [vmem:[#allocation8 + $0x1c0] sm:$0xff] }
  0x21   :  { %199 = vmatpush.msrb.mxu0 %v125_v9  ;;  %219 = vmatpush.msrb.mxu1 %v126_v10  ;;  %v107_v21 = vld [vmem:[#allocation5 + $0x10] sm:$0xff]  ;;  %v108_v22 = vld [vmem:[#allocation5 + $0x18] sm:$0xff]  ;;  %v121_v27 = vld [vmem:[#allocation5 + $0x80] sm:$0xff] }
  0x22   :  { %425 = vmatpush.msra.mxu3 %v333_v14  ;;  %406 = vmatpush.msra.mxu2 %v299_v15  ;;  %v127_v23 = vld [vmem:[#allocation5 + $0xb0] sm:$0xff]  ;;  %v128_v24 = vld [vmem:[#allocation5 + $0xb8] sm:$0xff]  ;;  %v122_v28 = vld [vmem:[#allocation5 + $0x88] sm:$0xff] }
  0x23   :  { %200 = vmatpush.msrb.mxu0 %v119_v11  ;;  %220 = vmatpush.msrb.mxu1 %v120_v12  ;;  %v293_v29 = vld [vmem:[#allocation8 + $0xb0] sm:$0xff]  ;;  %v291_v33 = vld [vmem:[#allocation8 + $0xa0] sm:$0xff]  ;;  %v302_v15 = vld [vmem:[#allocation8 + $0xf8] sm:$0xff] }
  0x24   :  { %426 = vmatpush.msra.mxu3 %v331_v16  ;;  %407 = vmatpush.msra.mxu2 %v297_v19  ;;  %v325_v30 = vld [vmem:[#allocation8 + $0x1b0] sm:$0xff]  ;;  %v323_v34 = vld [vmem:[#allocation8 + $0x1a0] sm:$0xff]  ;;  %v334_v16 = vld [vmem:[#allocation8 + $0x1f8] sm:$0xff] }
  0x25   :  { %201 = vmatpush.msrb.mxu0 %v113_v17  ;;  %221 = vmatpush.msrb.mxu1 %v114_v18  ;;  %v115_v31 = vld [vmem:[#allocation5 + $0x50] sm:$0xff]  ;;  %v116_v32 = vld [vmem:[#allocation5 + $0x58] sm:$0xff]  ;;  %v109_v35 = vld [vmem:[#allocation5 + $0x20] sm:$0xff] }
  0x26   :  { %427 = vmatpush.msra.mxu3 %v329_v20  ;;  %408 = vmatpush.msra.mxu2 %v295_v25  ;;  %v110_v36 = vld [vmem:[#allocation5 + $0x28] sm:$0xff]  ;;  %v365_v37 = vld [vmem:[#allocation8 + $0x2f0] sm:$0xff] }
  0x27   :  { %202 = vmatpush.msrb.mxu0 %v107_v21  ;;  %222 = vmatpush.msrb.mxu1 %v108_v22  ;;  %v397_v38 = vld [vmem:[#allocation8 + $0x3f0] sm:$0xff]  ;;  %v363_v41 = vld [vmem:[#allocation8 + $0x2e0] sm:$0xff]  ;;  %v300_v19 = vld [vmem:[#allocation8 + $0xe8] sm:$0xff] }
  0x28   :  { %898 = vmatmul.msk.f32.vlgmr.msrb.gmra.mxu0 %vm143_vm0, %v1186_v8  ;;  %899 = vmatmul.msk.f32.vlgmr.msrb.gmra.mxu1 %vm143_vm0, %v1186_v8  ;;  %v289_v39 = vld [vmem:[#allocation8 + $0x90] sm:$0xff]  ;;  %v395_v42 = vld [vmem:[#allocation8 + $0x3e0] sm:$0xff]  ;;  %v332_v20 = vld [vmem:[#allocation8 + $0x1e8] sm:$0xff] }
  0x29   :  { %239 = vmatpush.msra.mxu0 %v127_v23  ;;  %259 = vmatpush.msra.mxu1 %v128_v24  ;;  %v321_v40 = vld [vmem:[#allocation8 + $0x190] sm:$0xff]  ;;  %v287_v43 = vld [vmem:[#allocation8 + $0x80] sm:$0xff]  ;;  %v298_v23 = vld [vmem:[#allocation8 + $0xd8] sm:$0xff] }
  0x2a   :  { %428 = vmatpush.msra.mxu3 %v327_v26  ;;  %409 = vmatpush.msra.mxu2 %v293_v29  ;;  %v319_v44 = vld [vmem:[#allocation8 + $0x180] sm:$0xff]  ;;  %v361_v45 = vld [vmem:[#allocation8 + $0x2d0] sm:$0xff]  ;;  %v330_v24 = vld [vmem:[#allocation8 + $0x1d8] sm:$0xff] }
  0x2b   :  { %240 = vmatpush.msra.mxu0 %v121_v27  ;;  %260 = vmatpush.msra.mxu1 %v122_v28  ;;  %v393_v46 = vld [vmem:[#allocation8 + $0x3d0] sm:$0xff]  ;;  %v359_v49 = vld [vmem:[#allocation8 + $0x2c0] sm:$0xff]  ;;  %v296_v27 = vld [vmem:[#allocation8 + $0xc8] sm:$0xff] }
  0x2c   :  { %429 = vmatpush.msra.mxu3 %v325_v30  ;;  %410 = vmatpush.msra.mxu2 %v291_v33  ;;  %v285_v47 = vld [vmem:[#allocation8 + $0x70] sm:$0xff]  ;;  %v391_v50 = vld [vmem:[#allocation8 + $0x3c0] sm:$0xff]  ;;  %v328_v28 = vld [vmem:[#allocation8 + $0x1c8] sm:$0xff] }
  0x2d   :  { %241 = vmatpush.msra.mxu0 %v115_v31  ;;  %261 = vmatpush.msra.mxu1 %v116_v32  ;;  %v317_v48 = vld [vmem:[#allocation8 + $0x170] sm:$0xff]  ;;  %v283_v51 = vld [vmem:[#allocation8 + $0x60] sm:$0xff]  ;;  %v294_v31 = vld [vmem:[#allocation8 + $0xb8] sm:$0xff] }
  0x2e   :  { %430 = vmatpush.msra.mxu3 %v323_v34  ;;  %411 = vmatpush.msra.mxu2 %v289_v39  ;;  %v315_v52 = vld [vmem:[#allocation8 + $0x160] sm:$0xff]  ;;  %v357_v53 = vld [vmem:[#allocation8 + $0x2b0] sm:$0xff]  ;;  %v326_v32 = vld [vmem:[#allocation8 + $0x1b8] sm:$0xff] }
  0x2f   :  { %242 = vmatpush.msra.mxu0 %v109_v35  ;;  %262 = vmatpush.msra.mxu1 %v110_v36  ;;  %v389_v54 = vld [vmem:[#allocation8 + $0x3b0] sm:$0xff]  ;;  %v355_v57 = vld [vmem:[#allocation8 + $0x2a0] sm:$0xff]  ;;  %v366_v35 = vld [vmem:[#allocation8 + $0x2f8] sm:$0xff] }
  0x30   :  { %900 = vmatmul.msk.f32.vlgmr.msra.gmra.mxu0 %vm143_vm0, %v1186_v8  ;;  %901 = vmatmul.msk.f32.vlgmr.msra.gmra.mxu1 %vm143_vm0, %v1186_v8  ;;  %v281_v55 = vld [vmem:[#allocation8 + $0x50] sm:$0xff]  ;;  %v387_v58 = vld [vmem:[#allocation8 + $0x3a0] sm:$0xff]  ;;  %v398_v36 = vld [vmem:[#allocation8 + $0x3f8] sm:$0xff] }
  0x31   :  { %445 = vmatpush.msrb.mxu0 %v365_v37  ;;  %465 = vmatpush.msrb.mxu1 %v397_v38  ;;  %v313_v56 = vld [vmem:[#allocation8 + $0x150] sm:$0xff]  ;;  %v279_v59 = vld [vmem:[#allocation8 + $0x40] sm:$0xff]  ;;  %v292_v37 = vld [vmem:[#allocation8 + $0xa8] sm:$0xff] }
  0x32   :  { %431 = vmatpush.msra.mxu3 %v321_v40  ;;  %412 = vmatpush.msra.mxu2 %v287_v43  ;;  %v311_v60 = vld [vmem:[#allocation8 + $0x140] sm:$0xff]  ;;  %v353_v61 = vld [vmem:[#allocation8 + $0x290] sm:$0xff]  ;;  %v324_v38 = vld [vmem:[#allocation8 + $0x1a8] sm:$0xff] }
  0x33   :  { %446 = vmatpush.msrb.mxu0 %v363_v41  ;;  %466 = vmatpush.msrb.mxu1 %v395_v42  ;;  %v385_v62 = vld [vmem:[#allocation8 + $0x390] sm:$0xff]  ;;  %v351_v1 = vld [vmem:[#allocation8 + $0x280] sm:$0xff]  ;;  %v364_v39 = vld [vmem:[#allocation8 + $0x2e8] sm:$0xff] }
  0x34   :  { %432 = vmatpush.msra.mxu3 %v319_v44  ;;  %413 = vmatpush.msra.mxu2 %v285_v47  ;;  %v277_v63 = vld [vmem:[#allocation8 + $0x30] sm:$0xff]  ;;  %v383_v2 = vld [vmem:[#allocation8 + $0x380] sm:$0xff]  ;;  %v396_v40 = vld [vmem:[#allocation8 + $0x3e8] sm:$0xff] }
  0x35   :  { %447 = vmatpush.msrb.mxu0 %v361_v45  ;;  %467 = vmatpush.msrb.mxu1 %v393_v46  ;;  %v309_v0 = vld [vmem:[#allocation8 + $0x130] sm:$0xff]  ;;  %v275_v3 = vld [vmem:[#allocation8 + $0x20] sm:$0xff]  ;;  %v290_v41 = vld [vmem:[#allocation8 + $0x98] sm:$0xff] }
  0x36   :  { %433 = vmatpush.msra.mxu3 %v317_v48  ;;  %414 = vmatpush.msra.mxu2 %v283_v51  ;;  %v307_v4 = vld [vmem:[#allocation8 + $0x120] sm:$0xff]  ;;  %v349_v5 = vld [vmem:[#allocation8 + $0x270] sm:$0xff]  ;;  %v322_v42 = vld [vmem:[#allocation8 + $0x198] sm:$0xff] }
  0x37   :  { %448 = vmatpush.msrb.mxu0 %v359_v49  ;;  %468 = vmatpush.msrb.mxu1 %v391_v50  ;;  %v381_v6 = vld [vmem:[#allocation8 + $0x370] sm:$0xff]  ;;  %v347_v9 = vld [vmem:[#allocation8 + $0x260] sm:$0xff]  ;;  %v362_v43 = vld [vmem:[#allocation8 + $0x2d8] sm:$0xff] }
  0x38   :  { %434 = vmatpush.msra.mxu3 %v315_v52  ;;  %415 = vmatpush.msra.mxu2 %v281_v55  ;;  %v273_v7 = vld [vmem:[#allocation8 + $0x10] sm:$0xff]  ;;  %v379_v10 = vld [vmem:[#allocation8 + $0x360] sm:$0xff]  ;;  %v394_v44 = vld [vmem:[#allocation8 + $0x3d8] sm:$0xff] }
  0x39   :  { %449 = vmatpush.msrb.mxu0 %v357_v53  ;;  %469 = vmatpush.msrb.mxu1 %v389_v54  ;;  %v305_v8 = vld [vmem:[#allocation8 + $0x110] sm:$0xff]  ;;  %v271_v11 = vld [vmem:[#allocation8] sm:$0xff]  ;;  %v288_v45 = vld [vmem:[#allocation8 + $0x88] sm:$0xff] }
  0x3a   :  { %435 = vmatpush.msra.mxu3 %v313_v56  ;;  %416 = vmatpush.msra.mxu2 %v279_v59  ;;  %v303_v12 = vld [vmem:[#allocation8 + $0x100] sm:$0xff]  ;;  %v345_v13 = vld [vmem:[#allocation8 + $0x250] sm:$0xff]  ;;  %v320_v46 = vld [vmem:[#allocation8 + $0x188] sm:$0xff] }
  0x3b   :  { %450 = vmatpush.msrb.mxu0 %v355_v57  ;;  %470 = vmatpush.msrb.mxu1 %v387_v58  ;;  %v377_v14 = vld [vmem:[#allocation8 + $0x350] sm:$0xff]  ;;  %v343_v17 = vld [vmem:[#allocation8 + $0x240] sm:$0xff]  ;;  %v360_v47 = vld [vmem:[#allocation8 + $0x2c8] sm:$0xff] }
  0x3c   :  { %436 = vmatpush.msra.mxu3 %v311_v60  ;;  %417 = vmatpush.msra.mxu2 %v277_v63  ;;  %v375_v18 = vld [vmem:[#allocation8 + $0x340] sm:$0xff]  ;;  %v341_v21 = vld [vmem:[#allocation8 + $0x230] sm:$0xff]  ;;  %v392_v48 = vld [vmem:[#allocation8 + $0x3c8] sm:$0xff] }
  0x3d   :  { %451 = vmatpush.msrb.mxu0 %v353_v61  ;;  %471 = vmatpush.msrb.mxu1 %v385_v62  ;;  %v373_v22 = vld [vmem:[#allocation8 + $0x330] sm:$0xff]  ;;  %v339_v25 = vld [vmem:[#allocation8 + $0x220] sm:$0xff]  ;;  %v286_v49 = vld [vmem:[#allocation8 + $0x78] sm:$0xff] }
  0x3e   :  { %437 = vmatpush.msra.mxu3 %v309_v0  ;;  %418 = vmatpush.msra.mxu2 %v275_v3  ;;  %v371_v26 = vld [vmem:[#allocation8 + $0x320] sm:$0xff]  ;;  %v337_v29 = vld [vmem:[#allocation8 + $0x210] sm:$0xff]  ;;  %v318_v50 = vld [vmem:[#allocation8 + $0x178] sm:$0xff] }
  0x3f   :  { %452 = vmatpush.msrb.mxu0 %v351_v1  ;;  %472 = vmatpush.msrb.mxu1 %v383_v2  ;;  %v369_v30 = vld [vmem:[#allocation8 + $0x310] sm:$0xff]  ;;  %v335_v33 = vld [vmem:[#allocation8 + $0x200] sm:$0xff]  ;;  %v358_v51 = vld [vmem:[#allocation8 + $0x2b8] sm:$0xff] }
  0x40   :  { %438 = vmatpush.msra.mxu3 %v307_v4  ;;  %419 = vmatpush.msra.mxu2 %v273_v7  ;;  %v367_v34 = vld [vmem:[#allocation8 + $0x300] sm:$0xff]  ;;  %v390_v52 = vld [vmem:[#allocation8 + $0x3b8] sm:$0xff]  ;;  %v284_v53 = vld [vmem:[#allocation8 + $0x68] sm:$0xff] }
  0x41   :  { %453 = vmatpush.msrb.mxu0 %v349_v5  ;;  %473 = vmatpush.msrb.mxu1 %v381_v6  ;;  %v316_v54 = vld [vmem:[#allocation8 + $0x168] sm:$0xff]  ;;  %v282_v57 = vld [vmem:[#allocation8 + $0x58] sm:$0xff] }
  0x42   :  { %439 = vmatpush.msra.mxu3 %v305_v8  ;;  %420 = vmatpush.msra.mxu2 %v271_v11  ;;  %v356_v55 = vld [vmem:[#allocation8 + $0x2a8] sm:$0xff]  ;;  %v314_v58 = vld [vmem:[#allocation8 + $0x158] sm:$0xff] }
  0x43   :  { %454 = vmatpush.msrb.mxu0 %v347_v9  ;;  %474 = vmatpush.msrb.mxu1 %v379_v10  ;;  %v388_v56 = vld [vmem:[#allocation8 + $0x3a8] sm:$0xff]  ;;  %v354_v59 = vld [vmem:[#allocation8 + $0x298] sm:$0xff] }
  0x44   :  { %440 = vmatpush.msra.mxu3 %v303_v12  ;;  %485 = vmatpush.msrb.mxu2 %v302_v15  ;;  %v386_v60 = vld [vmem:[#allocation8 + $0x398] sm:$0xff]  ;;  %v280_v61 = vld [vmem:[#allocation8 + $0x48] sm:$0xff] }
  0x45   :  { %455 = vmatpush.msrb.mxu0 %v345_v13  ;;  %475 = vmatpush.msrb.mxu1 %v377_v14  ;;  %v312_v62 = vld [vmem:[#allocation8 + $0x148] sm:$0xff]  ;;  %v278_v1 = vld [vmem:[#allocation8 + $0x38] sm:$0xff] }
  0x46   :  { %505 = vmatpush.msrb.mxu3 %v334_v16  ;;  %486 = vmatpush.msrb.mxu2 %v300_v19  ;;  %v352_v63 = vld [vmem:[#allocation8 + $0x288] sm:$0xff]  ;;  %v310_v2 = vld [vmem:[#allocation8 + $0x138] sm:$0xff] }
  0x47   :  { %456 = vmatpush.msrb.mxu0 %v343_v17  ;;  %476 = vmatpush.msrb.mxu1 %v375_v18  ;;  %v384_v0 = vld [vmem:[#allocation8 + $0x388] sm:$0xff]  ;;  %v350_v3 = vld [vmem:[#allocation8 + $0x278] sm:$0xff] }
  0x48   :  { %506 = vmatpush.msrb.mxu3 %v332_v20  ;;  %487 = vmatpush.msrb.mxu2 %v298_v23  ;;  %v382_v4 = vld [vmem:[#allocation8 + $0x378] sm:$0xff]  ;;  %v276_v5 = vld [vmem:[#allocation8 + $0x28] sm:$0xff] }
  0x49   :  { %457 = vmatpush.msrb.mxu0 %v341_v21  ;;  %477 = vmatpush.msrb.mxu1 %v373_v22  ;;  %v308_v6 = vld [vmem:[#allocation8 + $0x128] sm:$0xff]  ;;  %v274_v9 = vld [vmem:[#allocation8 + $0x18] sm:$0xff] }
  0x4a   :  { %507 = vmatpush.msrb.mxu3 %v330_v24  ;;  %488 = vmatpush.msrb.mxu2 %v296_v27  ;;  %v348_v7 = vld [vmem:[#allocation8 + $0x268] sm:$0xff]  ;;  %v306_v10 = vld [vmem:[#allocation8 + $0x118] sm:$0xff] }
  0x4b   :  { %458 = vmatpush.msrb.mxu0 %v339_v25  ;;  %478 = vmatpush.msrb.mxu1 %v371_v26  ;;  %v380_v8 = vld [vmem:[#allocation8 + $0x368] sm:$0xff]  ;;  %v346_v11 = vld [vmem:[#allocation8 + $0x258] sm:$0xff] }
  0x4c   :  { %508 = vmatpush.msrb.mxu3 %v328_v28  ;;  %489 = vmatpush.msrb.mxu2 %v294_v31  ;;  %v378_v12 = vld [vmem:[#allocation8 + $0x358] sm:$0xff]  ;;  %v272_v13 = vld [vmem:[#allocation8 + $0x8] sm:$0xff] }
  0x4d   :  { %459 = vmatpush.msrb.mxu0 %v337_v29  ;;  %479 = vmatpush.msrb.mxu1 %v369_v30  ;;  %v304_v14 = vld [vmem:[#allocation8 + $0x108] sm:$0xff]  ;;  %v342_v17 = vld [vmem:[#allocation8 + $0x238] sm:$0xff] }
  0x4e   :  { %509 = vmatpush.msrb.mxu3 %v326_v32  ;;  %490 = vmatpush.msrb.mxu2 %v292_v37  ;;  %v344_v15 = vld [vmem:[#allocation8 + $0x248] sm:$0xff]  ;;  %v374_v18 = vld [vmem:[#allocation8 + $0x338] sm:$0xff] }
  0x4f   :  { %460 = vmatpush.msrb.mxu0 %v335_v33  ;;  %480 = vmatpush.msrb.mxu1 %v367_v34  ;;  %v376_v16 = vld [vmem:[#allocation8 + $0x348] sm:$0xff]  ;;  %v338_v21 = vld [vmem:[#allocation8 + $0x218] sm:$0xff] }
  0x50   :  { %510 = vmatpush.msrb.mxu3 %v324_v38  ;;  %491 = vmatpush.msrb.mxu2 %v290_v41  ;;  %v340_v19 = vld [vmem:[#allocation8 + $0x228] sm:$0xff]  ;;  %v370_v22 = vld [vmem:[#allocation8 + $0x318] sm:$0xff] }
  0x51   :  { %525 = vmatpush.msra.mxu0 %v366_v35  ;;  %545 = vmatpush.msra.mxu1 %v398_v36  ;;  %v372_v20 = vld [vmem:[#allocation8 + $0x328] sm:$0xff]  ;;  %v129_v23 = vld [vmem:[#allocation7] sm:$0x3f] }
  0x52   :  { %511 = vmatpush.msrb.mxu3 %v322_v42  ;;  %492 = vmatpush.msrb.mxu2 %v288_v45  ;;  %v336_v24 = vld [vmem:[#allocation8 + $0x208] sm:$0xff]  ;;  %v131_v26 = vperm.slane %v129_v23, 0  ;;  %v132_v27 = vperm.slane %v129_v23, 1  ;;  %v133_v32 = vperm.slane %v129_v23, 2  ;;  %v134_v33 = vperm.slane %v129_v23, 3  ;;  %v657_v45 = vld [vmem:[#allocation10 + $0x2d0] sm:$0xff] }
  0x53   :  { %526 = vmatpush.msra.mxu0 %v364_v39  ;;  %546 = vmatpush.msra.mxu1 %v396_v40  ;;  %v368_v25 = vld [vmem:[#allocation8 + $0x308] sm:$0xff]  ;;  %v135_v42 = vperm.slane %v129_v23, 4 }
  0x54   :  { %512 = vmatpush.msrb.mxu3 %v320_v46  ;;  %493 = vmatpush.msrb.mxu2 %v286_v49  ;;  %v612_v40 = vld [vmem:[#allocation10 + $0x168] sm:$0xff]  ;;  %v606_v46 = vld [vmem:[#allocation10 + $0x138] sm:$0xff] }
  0x55   :  { %527 = vmatpush.msra.mxu0 %v362_v43  ;;  %547 = vmatpush.msra.mxu1 %v394_v44  ;;  %v660_v41 = vld [vmem:[#allocation10 + $0x2e8] sm:$0xff]  ;;  %v136_v43 = vperm.slane %v129_v23, 5  ;;  %v609_v44 = vld [vmem:[#allocation10 + $0x150] sm:$0xff] }
  0x56   :  { %513 = vmatpush.msrb.mxu3 %v318_v50  ;;  %494 = vmatpush.msrb.mxu2 %v284_v53  ;;  %v651_v53 = vld [vmem:[#allocation10 + $0x2a0] sm:$0xff]  ;;  %v621_v23 = vld [vmem:[#allocation10 + $0x1b0] sm:$0xff] }
  0x57   :  { %528 = vmatpush.msra.mxu0 %v360_v47  ;;  %548 = vmatpush.msra.mxu1 %v392_v48  ;;  %v654_v47 = vld [vmem:[#allocation10 + $0x2b8] sm:$0xff] }
  0x58   :  { %514 = vmatpush.msrb.mxu3 %v316_v54  ;;  %495 = vmatpush.msrb.mxu2 %v282_v57  ;;  %v648_v57 = vld [vmem:[#allocation10 + $0x288] sm:$0xff] }
  0x59   :  { %529 = vmatpush.msra.mxu0 %v358_v51  ;;  %549 = vmatpush.msra.mxu1 %v390_v52  ;;  %v603_v52 = vld [vmem:[#allocation10 + $0x120] sm:$0xff] }
  0x5a   :  { %515 = vmatpush.msrb.mxu3 %v314_v58  ;;  %496 = vmatpush.msrb.mxu2 %v280_v61  ;;  %v597_v58 = vld [vmem:[#allocation10 + $0xf0] sm:$0xff]  ;;  %v588_v61 = vld [vmem:[#allocation10 + $0xa8] sm:$0xff] }
  0x5b   :  { %530 = vmatpush.msra.mxu0 %v356_v55  ;;  %550 = vmatpush.msra.mxu1 %v388_v56  ;;  %v600_v56 = vld [vmem:[#allocation10 + $0x108] sm:$0xff] }
  0x5c   :  { %516 = vmatpush.msrb.mxu3 %v312_v62  ;;  %497 = vmatpush.msrb.mxu2 %v278_v1  ;;  %v585_v62 = vld [vmem:[#allocation10 + $0x90] sm:$0xff]  ;;  %v642_v1 = vld [vmem:[#allocation10 + $0x258] sm:$0xff] }
  0x5d   :  { %531 = vmatpush.msra.mxu0 %v354_v59  ;;  %551 = vmatpush.msra.mxu1 %v386_v60  ;;  %v594_v59 = vld [vmem:[#allocation10 + $0xd8] sm:$0xff]  ;;  %v591_v60 = vld [vmem:[#allocation10 + $0xc0] sm:$0xff] }
  0x5e   :  { %517 = vmatpush.msrb.mxu3 %v310_v2  ;;  %498 = vmatpush.msrb.mxu2 %v276_v5  ;;  %v579_v2 = vld [vmem:[#allocation10 + $0x60] sm:$0xff]  ;;  %v576_v5 = vld [vmem:[#allocation10 + $0x48] sm:$0xff] }
  0x5f   :  { %532 = vmatpush.msra.mxu0 %v352_v63  ;;  %552 = vmatpush.msra.mxu1 %v384_v0  ;;  %v645_v63 = vld [vmem:[#allocation10 + $0x270] sm:$0xff]  ;;  %v582_v0 = vld [vmem:[#allocation10 + $0x78] sm:$0xff] }
  0x60   :  { %518 = vmatpush.msrb.mxu3 %v308_v6  ;;  %499 = vmatpush.msrb.mxu2 %v274_v9  ;;  %v636_v6 = vld [vmem:[#allocation10 + $0x228] sm:$0xff]  ;;  %v633_v9 = vld [vmem:[#allocation10 + $0x210] sm:$0xff] }
  0x61   :  { %533 = vmatpush.msra.mxu0 %v350_v3  ;;  %553 = vmatpush.msra.mxu1 %v382_v4  ;;  %v639_v3 = vld [vmem:[#allocation10 + $0x240] sm:$0xff]  ;;  %v613_v4 = vld [vmem:[#allocation10 + $0x170] sm:$0xff] }
  0x62   :  { %519 = vmatpush.msrb.mxu3 %v306_v10  ;;  %500 = vmatpush.msrb.mxu2 %v272_v13  ;;  %v607_v10 = vld [vmem:[#allocation10 + $0x140] sm:$0xff]  ;;  %v604_v13 = vld [vmem:[#allocation10 + $0x128] sm:$0xff] }
  0x63   :  { %534 = vmatpush.msra.mxu0 %v348_v7  ;;  %554 = vmatpush.msra.mxu1 %v380_v8  ;;  %v610_v7 = vld [vmem:[#allocation10 + $0x158] sm:$0xff]  ;;  %v573_v8 = vld [vmem:[#allocation10 + $0x30] sm:$0xff] }
  0x64   :  { %520 = vmatpush.msrb.mxu3 %v304_v14  ;;  %v567_v14 = vld [vmem:[#allocation10] sm:$0xff] }
  0x65   :  { %535 = vmatpush.msra.mxu0 %v346_v11  ;;  %555 = vmatpush.msra.mxu1 %v378_v12  ;;  %v570_v11 = vld [vmem:[#allocation10 + $0x18] sm:$0xff] }
  0x66   :  { %v630_v12 = vld [vmem:[#allocation10 + $0x1f8] sm:$0xff] }
  0x67   :  { %536 = vmatpush.msra.mxu0 %v344_v15  ;;  %556 = vmatpush.msra.mxu1 %v376_v16  ;;  %v627_v15 = vld [vmem:[#allocation10 + $0x1e0] sm:$0xff]  ;;  %v601_v16 = vld [vmem:[#allocation10 + $0x110] sm:$0xff] }
  0x69   :  { %537 = vmatpush.msra.mxu0 %v342_v17  ;;  %557 = vmatpush.msra.mxu1 %v374_v18  ;;  %v661_v17 = vld [vmem:[#allocation10 + $0x2f0] sm:$0xff]  ;;  %v614_v18 = vld [vmem:[#allocation10 + $0x178] sm:$0xff] }
  0x6b   :  { %538 = vmatpush.msra.mxu0 %v340_v19  ;;  %558 = vmatpush.msra.mxu1 %v372_v20  ;;  %v624_v19 = vld [vmem:[#allocation10 + $0x1c8] sm:$0xff]  ;;  %v598_v20 = vld [vmem:[#allocation10 + $0xf8] sm:$0xff] }
  0x6d   :  { %539 = vmatpush.msra.mxu0 %v338_v21  ;;  %559 = vmatpush.msra.mxu1 %v370_v22  ;;  %v658_v21 = vld [vmem:[#allocation10 + $0x2d8] sm:$0xff]  ;;  %v611_v22 = vld [vmem:[#allocation10 + $0x160] sm:$0xff] }
  0x6f   :  { %540 = vmatpush.msra.mxu0 %v336_v24  ;;  %560 = vmatpush.msra.mxu1 %v368_v25  ;;  %v595_v24 = vld [vmem:[#allocation10 + $0xe0] sm:$0xff] }
  0x70   :  { %v655_v25 = vld [vmem:[#allocation10 + $0x2c0] sm:$0xff] }
  0x9d   :  { %v164_v28 = vpop.f32.mrf.mxu0  ;;  %v184_v29 = vpop.f32.mrf.mxu1 }
  0x9e   :  { %v1200_v30 = vadd.f32 %v164_v28, %v131_v26  ;;  %v1202_v31 = vadd.f32 %v184_v29, %v132_v27  ;;  %v608_v26 = vld [vmem:[#allocation10 + $0x148] sm:$0xff]  ;;  %v618_v27 = vld [vmem:[#allocation10 + $0x198] sm:$0xff] }
  0x9f   :  { %v592_v28 = vld [vmem:[#allocation10 + $0xc8] sm:$0xff] }
  0xa0   :  { %791 = vst [vmem:[#allocation11] sm:$0xff] %v1200_v30  ;;  %796 = vmax.xlane.f32.xlu0 %v1200_v30  ;;  %v652_v29 = vld [vmem:[#allocation10 + $0x2a8] sm:$0xff] }
  0xa1   :  { %792 = vst [vmem:[#allocation11 + $0x8] sm:$0xff] %v1202_v31 }
  0xa5   :  { %v204_v34 = vpop.f32.mrf.mxu0  ;;  %v224_v35 = vpop.f32.mrf.mxu1 }
  0xa6   :  { %v205_v36 = vadd.f32 %v204_v34, %v133_v32  ;;  %v225_v37 = vadd.f32 %v224_v35, %v134_v33  ;;  %v605_v32 = vld [vmem:[#allocation10 + $0x130] sm:$0xff]  ;;  %v615_v33 = vld [vmem:[#allocation10 + $0x180] sm:$0xff] }
  0xa7   :  { %v589_v34 = vld [vmem:[#allocation10 + $0xb0] sm:$0xff] }
  0xa8   :  { %v267_v38 = vmax.f32 %v205_v36, 0.0  ;;  %v268_v39 = vmax.f32 %v225_v37, 0.0  ;;  %809 = vmax.xlane.f32.xlu0 %v1202_v31  ;;  %v649_v35 = vld [vmem:[#allocation10 + $0x290] sm:$0xff]  ;;  %v602_v36 = vld [vmem:[#allocation10 + $0x118] sm:$0xff] }
  0xa9   :  { %v662_v37 = vld [vmem:[#allocation10 + $0x2f8] sm:$0xff] }
  0xaa   :  { %421 = vmatmul.f32.vlgmr.msra.gmra.mxu2 %v267_v38  ;;  %441 = vmatmul.f32.vlgmr.msra.gmra.mxu3 %v268_v39 }
  0xab   :  { %671 = vmatpush.msra.mxu2 %v612_v40  ;;  %691 = vmatpush.msra.mxu3 %v660_v41  ;;  %v599_v40 = vld [vmem:[#allocation10 + $0x100] sm:$0xff] }
  0xac   :  { %v659_v41 = vld [vmem:[#allocation10 + $0x2e0] sm:$0xff] }
  0xad   :  { %v244_v48 = vpop.f32.mrf.mxu0  ;;  %v264_v49 = vpop.f32.mrf.mxu1  ;;  %672 = vmatpush.msra.mxu2 %v609_v44  ;;  %692 = vmatpush.msra.mxu3 %v657_v45  ;;  %v596_v44 = vld [vmem:[#allocation10 + $0xe8] sm:$0xff] }
  0xae   :  { %v245_v50 = vadd.f32 %v244_v48, %v135_v42  ;;  %v265_v51 = vadd.f32 %v264_v49, %v136_v43  ;;  %v583_v42 = vld [vmem:[#allocation10 + $0x80] sm:$0xff]  ;;  %v656_v45 = vld [vmem:[#allocation10 + $0x2c8] sm:$0xff]  ;;  %v593_v48 = vld [vmem:[#allocation10 + $0xd0] sm:$0xff] }
  0xaf   :  { %673 = vmatpush.msra.mxu2 %v606_v46  ;;  %693 = vmatpush.msra.mxu3 %v654_v47  ;;  %v643_v43 = vld [vmem:[#allocation10 + $0x260] sm:$0xff]  ;;  %v580_v46 = vld [vmem:[#allocation10 + $0x68] sm:$0xff]  ;;  %v653_v49 = vld [vmem:[#allocation10 + $0x2b0] sm:$0xff] }
  0xb0   :  { %v269_v54 = vmax.f32 %v245_v50, 0.0  ;;  %v270_v55 = vmax.f32 %v265_v51, 0.0  ;;  %v640_v47 = vld [vmem:[#allocation10 + $0x248] sm:$0xff]  ;;  %v577_v50 = vld [vmem:[#allocation10 + $0x50] sm:$0xff] }
  0xb1   :  { %674 = vmatpush.msra.mxu2 %v603_v52  ;;  %694 = vmatpush.msra.mxu3 %v651_v53  ;;  %v637_v51 = vld [vmem:[#allocation10 + $0x230] sm:$0xff]  ;;  %v590_v52 = vld [vmem:[#allocation10 + $0xb8] sm:$0xff] }
  0xb2   :  { %461 = vmatmul.f32.vlgmr.msrb.gmra.mxu0 %v269_v54  ;;  %481 = vmatmul.f32.vlgmr.msrb.gmra.mxu1 %v270_v55  ;;  %v650_v53 = vld [vmem:[#allocation10 + $0x298] sm:$0xff] }
  0xb3   :  { %501 = vmatmul.f32.vlgmr.msrb.gmra.mxu2 %v267_v38  ;;  %521 = vmatmul.f32.vlgmr.msrb.gmra.mxu3 %v268_v39  ;;  %v586_v38 = vld [vmem:[#allocation10 + $0x98] sm:$0xff] }
  0xb4   :  { %675 = vmatpush.msra.mxu2 %v600_v56  ;;  %695 = vmatpush.msra.mxu3 %v648_v57  ;;  %v646_v39 = vld [vmem:[#allocation10 + $0x278] sm:$0xff]  ;;  %v587_v57 = vld [vmem:[#allocation10 + $0xa0] sm:$0xff] }
  0xb5   :  { %711 = vmatpush.msrb.mxu0 %v613_v4  ;;  %731 = vmatpush.msrb.mxu1 %v661_v17  ;;  %v634_v56 = vld [vmem:[#allocation10 + $0x218] sm:$0xff]  ;;  %v629_v17 = vld [vmem:[#allocation10 + $0x1f0] sm:$0xff] }
  0xb6   :  { %676 = vmatpush.msra.mxu2 %v597_v58  ;;  %696 = vmatpush.msra.mxu3 %v645_v63  ;;  %v647_v58 = vld [vmem:[#allocation10 + $0x280] sm:$0xff]  ;;  %v568_v63 = vld [vmem:[#allocation10 + $0x8] sm:$0xff]  ;;  %v578_v4 = vld [vmem:[#allocation10 + $0x58] sm:$0xff] }
  0xb7   :  { %712 = vmatpush.msrb.mxu0 %v610_v7  ;;  %732 = vmatpush.msrb.mxu1 %v658_v21  ;;  %v622_v7 = vld [vmem:[#allocation10 + $0x1b8] sm:$0xff]  ;;  %v617_v21 = vld [vmem:[#allocation10 + $0x190] sm:$0xff] }
  0xb8   :  { %677 = vmatpush.msra.mxu2 %v594_v59  ;;  %697 = vmatpush.msra.mxu3 %v642_v1  ;;  %v571_v59 = vld [vmem:[#allocation10 + $0x20] sm:$0xff]  ;;  %v581_v1 = vld [vmem:[#allocation10 + $0x70] sm:$0xff] }
  0xb9   :  { %713 = vmatpush.msrb.mxu0 %v607_v10  ;;  %733 = vmatpush.msrb.mxu1 %v655_v25 }
  0xba   :  { %541 = vmatmul.f32.vlgmr.msra.gmra.mxu0 %v269_v54  ;;  %561 = vmatmul.f32.vlgmr.msra.gmra.mxu1 %v270_v55  ;;  %v574_v55 = vld [vmem:[#allocation10 + $0x38] sm:$0xff] }
  0xbb   :  { %678 = vmatpush.msra.mxu2 %v591_v60  ;;  %698 = vmatpush.msra.mxu3 %v639_v3  ;;  %v631_v60 = vld [vmem:[#allocation10 + $0x200] sm:$0xff]  ;;  %v625_v3 = vld [vmem:[#allocation10 + $0x1d0] sm:$0xff] }
  0xbc   :  { %714 = vmatpush.msrb.mxu0 %v604_v13  ;;  %734 = vmatpush.msrb.mxu1 %v652_v29  ;;  %v632_v13 = vld [vmem:[#allocation10 + $0x208] sm:$0xff] }
  0xbd   :  { %679 = vmatpush.msra.mxu2 %v588_v61  ;;  %699 = vmatpush.msra.mxu3 %v636_v6  ;;  %v584_v61 = vld [vmem:[#allocation10 + $0x88] sm:$0xff] }
  0xbe   :  { %715 = vmatpush.msrb.mxu0 %v601_v16  ;;  %735 = vmatpush.msrb.mxu1 %v649_v35  ;;  %v569_v16 = vld [vmem:[#allocation10 + $0x10] sm:$0xff] }
  0xbf   :  { %680 = vmatpush.msra.mxu2 %v585_v62  ;;  %700 = vmatpush.msra.mxu3 %v633_v9  ;;  %v644_v62 = vld [vmem:[#allocation10 + $0x268] sm:$0xff]  ;;  %v635_v9 = vld [vmem:[#allocation10 + $0x220] sm:$0xff] }
  0xc0   :  { %716 = vmatpush.msrb.mxu0 %v598_v20  ;;  %736 = vmatpush.msrb.mxu1 %v646_v39 }
  0xc1   :  { %681 = vmatpush.msra.mxu2 %v582_v0  ;;  %701 = vmatpush.msra.mxu3 %v630_v12  ;;  %v628_v0 = vld [vmem:[#allocation10 + $0x1e8] sm:$0xff] }
  0xc2   :  { %717 = vmatpush.msrb.mxu0 %v595_v24  ;;  %737 = vmatpush.msrb.mxu1 %v643_v43  ;;  %v572_v12 = vld [vmem:[#allocation10 + $0x28] sm:$0xff] }
  0xc3   :  { %682 = vmatpush.msra.mxu2 %v579_v2  ;;  %702 = vmatpush.msra.mxu3 %v627_v15  ;;  %v641_v2 = vld [vmem:[#allocation10 + $0x250] sm:$0xff]  ;;  %v616_v15 = vld [vmem:[#allocation10 + $0x188] sm:$0xff] }
  0xc4   :  { %718 = vmatpush.msrb.mxu0 %v592_v28  ;;  %738 = vmatpush.msrb.mxu1 %v640_v47 }
  0xc5   :  { %683 = vmatpush.msra.mxu2 %v576_v5  ;;  %703 = vmatpush.msra.mxu3 %v624_v19  ;;  %v638_v5 = vld [vmem:[#allocation10 + $0x238] sm:$0xff]  ;;  %v623_v19 = vld [vmem:[#allocation10 + $0x1c0] sm:$0xff] }
  0xc6   :  { %719 = vmatpush.msrb.mxu0 %v589_v34  ;;  %739 = vmatpush.msrb.mxu1 %v637_v51  ;;  %v663_v51 = vld [vmem:[%s1231_s6] sm:$0x7]  ;;  %s1124_s6 = smov [#allocation11]  }
  0xc7   :  { %684 = vmatpush.msra.mxu2 %v573_v8  ;;  %704 = vmatpush.msra.mxu3 %v621_v23  ;;  %v575_v8 = vld [vmem:[#allocation10 + $0x40] sm:$0xff]  ;;  %s866_s12 = sshll.u32 %s1124_s6, 4  ;;  %s867_s12 = int_to_ptr.vmem [resolvable:$true] %s866_s12 }
  0xc8   :  { %720 = vmatpush.msrb.mxu0 %v586_v38  ;;  %740 = vmatpush.msrb.mxu1 %v634_v56 }
  0xc9   :  { %685 = vmatpush.msra.mxu2 %v570_v11  ;;  %705 = vmatpush.msra.mxu3 %v618_v27  ;;  %v619_v11 = vld [vmem:[#allocation10 + $0x1a0] sm:$0xff] }
  0xca   :  { %721 = vmatpush.msrb.mxu0 %v583_v42  ;;  %741 = vmatpush.msrb.mxu1 %v631_v60 }
  0xcb   :  { %686 = vmatpush.msra.mxu2 %v567_v14  ;;  %706 = vmatpush.msra.mxu3 %v615_v33 }
  0xcc   :  { %722 = vmatpush.msrb.mxu0 %v580_v46  ;;  %742 = vmatpush.msrb.mxu1 %v628_v0 }
  0xcd   :  { %751 = vmatpush.msrb.mxu2 %v614_v18  ;;  %771 = vmatpush.msrb.mxu3 %v662_v37  ;;  %v626_v18 = vld [vmem:[#allocation10 + $0x1d8] sm:$0xff] }
  0xce   :  { %723 = vmatpush.msrb.mxu0 %v577_v50  ;;  %743 = vmatpush.msrb.mxu1 %v625_v3 }
  0xcf   :  { %752 = vmatpush.msrb.mxu2 %v611_v22  ;;  %772 = vmatpush.msrb.mxu3 %v659_v41  ;;  %v399_v22 = vld [vmem:[%s1229_s4] sm:$0x3] }
  0xd0   :  { %724 = vmatpush.msrb.mxu0 %v574_v55  ;;  %744 = vmatpush.msrb.mxu1 %v622_v7  ;;  %v401_v23 = vperm.slane %v399_v22, 0  ;;  %v402_v33 = vperm.slane %v399_v22, 1 }
  0xd1   :  { %753 = vmatpush.msrb.mxu2 %v608_v26  ;;  %773 = vmatpush.msrb.mxu3 %v656_v45 }
  0xd2   :  { %725 = vmatpush.msrb.mxu0 %v571_v59  ;;  %745 = vmatpush.msrb.mxu1 %v619_v11 }
  0xd3   :  { %754 = vmatpush.msrb.mxu2 %v605_v32  ;;  %774 = vmatpush.msrb.mxu3 %v653_v49 }
  0xd4   :  { %726 = vmatpush.msrb.mxu0 %v568_v63  ;;  %746 = vmatpush.msrb.mxu1 %v616_v15  ;;  %v667_v63 = vperm.slane %v663_v51, 2 }
  0xd5   :  { %755 = vmatpush.msrb.mxu2 %v602_v36  ;;  %775 = vmatpush.msrb.mxu3 %v650_v53 }
  0xd7   :  { %756 = vmatpush.msrb.mxu2 %v599_v40  ;;  %776 = vmatpush.msrb.mxu3 %v647_v58  ;;  %v665_v58 = vperm.slane %v663_v51, 0 }
  0xd9   :  { %757 = vmatpush.msrb.mxu2 %v596_v44  ;;  %777 = vmatpush.msrb.mxu3 %v644_v62 }
  0xdb   :  { %758 = vmatpush.msrb.mxu2 %v593_v48  ;;  %778 = vmatpush.msrb.mxu3 %v641_v2 }
  0xdd   :  { %759 = vmatpush.msrb.mxu2 %v590_v52  ;;  %779 = vmatpush.msrb.mxu3 %v638_v5  ;;  %v666_v52 = vperm.slane %v663_v51, 1 }
  0xdf   :  { %760 = vmatpush.msrb.mxu2 %v587_v57  ;;  %780 = vmatpush.msrb.mxu3 %v635_v9 }
  0xe1   :  { %761 = vmatpush.msrb.mxu2 %v584_v61  ;;  %781 = vmatpush.msrb.mxu3 %v632_v13 }
  0xe3   :  { %762 = vmatpush.msrb.mxu2 %v581_v1  ;;  %782 = vmatpush.msrb.mxu3 %v629_v17 }
  0xe5   :  { %763 = vmatpush.msrb.mxu2 %v578_v4  ;;  %783 = vmatpush.msrb.mxu3 %v626_v18 }
  0xe7   :  { %764 = vmatpush.msrb.mxu2 %v575_v8  ;;  %784 = vmatpush.msrb.mxu3 %v623_v19 }
  0xe9   :  { %765 = vmatpush.msrb.mxu2 %v572_v12 }
  0xeb   :  { %766 = vmatpush.msrb.mxu2 %v569_v16 }
 0x113   :  { %v1208_v54 = vpop.xlane.xlu0 %796 }
 0x114   :  { %v798_v0 = vsub.f32 %v1200_v30, %v1208_v54 }
 0x116   :  { %v799_v3 = vmul.f32 1.442695, %v798_v0 }
 0x11b   :  { %v810_v6 = vpop.xlane.xlu0 %809 }
 0x11c   :  { %v811_v10 = vsub.f32 %v1202_v31, %v810_v6  ;;  %v620_v31 = vld [vmem:[#allocation10 + $0x1a8] sm:$0xff] }
 0x11d   :  { %785 = vmatpush.msrb.mxu3 %v620_v31 }
 0x11e   :  { %v812_v14 = vmul.f32 1.442695, %v811_v10 }
 0x11f   :  { %786 = vmatpush.msrb.mxu3 %v617_v21 }
 0x120   :  { %915 = vpow2.f32 %v812_v14 }
 0x126   :  { %v916_v20 = vpop.eup %915 }
 0x127   :  { %814 = vadd.xlane.f32.xlu0 %v916_v20 }
 0x12d   :  { %v422_v24 = vpop.f32.mrf.mxu2  ;;  %v442_v26 = vpop.f32.mrf.mxu3 }
 0x12e   :  { %v423_v25 = vadd.f32 %v422_v24, %v401_v23 }
 0x12f   :  { %v462_v28 = vpop.f32.mrf.mxu0  ;;  %v482_v32 = vpop.f32.mrf.mxu1 }
 0x130   :  { %v443_v27 = vadd.f32 %v442_v26, %v423_v25 }
 0x132   :  { %v463_v29 = vadd.f32 %v462_v28, %v443_v27 }
 0x134   :  { %v483_v34 = vadd.f32 %v482_v32, %v463_v29 }
 0x136   :  { %v565_v35 = vmax.f32 %v483_v34, 0.0  ;;  %v502_v36 = vpop.f32.mrf.mxu2  ;;  %v522_v38 = vpop.f32.mrf.mxu3 }
 0x137   :  { %v503_v37 = vadd.f32 %v502_v36, %v402_v33  ;;  %v542_v40 = vpop.f32.mrf.mxu0  ;;  %v562_v42 = vpop.f32.mrf.mxu1 }
 0x138   :  { %687 = vmatmul.f32.vlgmr.msra.gmra.mxu2 %v565_v35  ;;  %727 = vmatmul.f32.vlgmr.msrb.gmra.mxu0 %v565_v35 }
 0x139   :  { %v523_v39 = vadd.f32 %v522_v38, %v503_v37 }
 0x13b   :  { %v543_v41 = vadd.f32 %v542_v40, %v523_v39 }
 0x13d   :  { %v563_v43 = vadd.f32 %v562_v42, %v543_v41 }
 0x13f   :  { %v566_v44 = vmax.f32 %v563_v43, 0.0 }
 0x140   :  { %767 = vmatmul.f32.vlgmr.msrb.gmra.mxu2 %v565_v35 }
 0x141   :  { %707 = vmatmul.f32.vlgmr.msra.gmra.mxu3 %v566_v44  ;;  %747 = vmatmul.f32.vlgmr.msrb.gmra.mxu1 %v566_v44 }
 0x149   :  { %787 = vmatmul.f32.vlgmr.msrb.gmra.mxu3 %v566_v44 }
 0x19a   :  { %v815_v45 = vpop.xlane.xlu0 %814 }
 0x19b   :  { %917 = vrcp.f32 %v815_v45 }
 0x19c   :  { %919 = vpow2.f32 %v799_v3 }
 0x1a1   :  { %v918_v46 = vpop.eup %917 }
 0x1a2   :  { %v817_v47 = vmul.f32 %v918_v46, %v815_v45  ;;  %v920_v6 = vpop.eup %919 }
 0x1a4   :  { %v818_v48 = vsub.f32 2.0, %v817_v47 }
 0x1a6   :  { %v819_v49 = vmul.f32 %v918_v46, %v818_v48 }
 0x1a8   :  { %v820_v50 = vmul.f32 %v916_v20, %v819_v49 }
 0x1aa   :  { %821 = vst [vmem:[#allocation12 + $0x8] sm:$0xff] %v820_v50 }
 0x1b5   :  { %v728_v53 = vpop.f32.mrf.mxu0 }
 0x1b6   :  { %v729_v55 = vadd.f32 %v728_v53, %v666_v52 }
 0x1bb   :  { %v688_v56 = vpop.f32.mrf.mxu2 }
 0x1bc   :  { %v689_v60 = vadd.f32 %v688_v56, %v665_v58 }
 0x1be   :  { %v748_v57 = vpop.f32.mrf.mxu1 }
 0x1bf   :  { %v749_v59 = vadd.f32 %v748_v57, %v729_v55 }
 0x1c1   :  { %794 = vst [vmem:[#allocation11 + $0x18] sm:$0xff] %v749_v59 }
 0x1c3   :  { %v768_v1 = vpop.f32.mrf.mxu2 }
 0x1c4   :  { %v708_v61 = vpop.f32.mrf.mxu3  ;;  %v769_v2 = vadd.f32 %v768_v1, %v667_v63 }
 0x1c5   :  { %v709_v62 = vadd.f32 %v708_v61, %v689_v60 }
 0x1c7   :  { %793 = vst [vmem:[#allocation11 + $0x10] sm:$0xff] %v709_v62  ;;  %822 = vmax.xlane.f32.xlu1 %v709_v62 }
 0x1cc   :  { %v788_v4 = vpop.f32.mrf.mxu3 }
 0x1cd   :  { %v789_v5 = vadd.f32 %v788_v4, %v769_v2 }
 0x1cf   :  { %795 = vst [vmem:[#allocation11 + $0x20] sm:$0xff] %v789_v5  ;;  %848 = vmax.xlane.f32.xlu2 %v789_v5  ;;  %835 = vmax.xlane.f32.xlu1 %v749_v59 }
 0x1d0   :  { %871 = dma.vmem_to_hbm [thread:$0]  %s867_s12, 640, %s869_s15, [#allocation4]  }
 0x1d7   :  { %801 = vadd.xlane.f32.xlu2 %v920_v6 }
 0x23a   :  { %v823_v7 = vpop.xlane.xlu1 %822 }
 0x23b   :  { %v824_v8 = vsub.f32 %v709_v62, %v823_v7 }
 0x23d   :  { %v825_v9 = vmul.f32 1.442695, %v824_v8 }
 0x23f   :  { %921 = vpow2.f32 %v825_v9 }
 0x242   :  { %v849_v10 = vpop.xlane.xlu2 %848  ;;  %v836_v11 = vpop.xlane.xlu1 %835 }
 0x243   :  { %v850_v12 = vsub.f32 %v789_v5, %v849_v10  ;;  %v837_v13 = vsub.f32 %v749_v59, %v836_v11 }
 0x245   :  { %v922_v30 = vpop.eup %921  ;;  %v851_v54 = vmul.f32 1.442695, %v850_v12  ;;  %v838_v14 = vmul.f32 1.442695, %v837_v13 }
 0x246   :  { %827 = vadd.xlane.f32.xlu1 %v922_v30 }
 0x247   :  { %923 = vpow2.f32 %v851_v54 }
 0x248   :  { %925 = vpow2.f32 %v838_v14 }
 0x24a   :  { %v802_v15 = vpop.xlane.xlu2 %801 }
 0x24b   :  { %927 = vrcp.f32 %v802_v15 }
 0x24d   :  { %v924_v16 = vpop.eup %923 }
 0x24e   :  { %v926_v17 = vpop.eup %925  ;;  %853 = vadd.xlane.f32.xlu0 %v924_v16 }
 0x24f   :  { %840 = vadd.xlane.f32.xlu2 %v926_v17 }
 0x251   :  { %v928_v18 = vpop.eup %927 }
 0x252   :  { %v804_v19 = vmul.f32 %v928_v18, %v802_v15 }
 0x254   :  { %v805_v31 = vsub.f32 2.0, %v804_v19 }
 0x256   :  { %v806_v20 = vmul.f32 %v928_v18, %v805_v31 }
 0x258   :  { %v807_v21 = vmul.f32 %v920_v6, %v806_v20 }
 0x25a   :  { %808 = vst [vmem:[#allocation12] sm:$0xff] %v807_v21 }
 0x2b9   :  { %v828_v22 = vpop.xlane.xlu1 %827 }
 0x2ba   :  { %929 = vrcp.f32 %v828_v22 }
 0x2c0   :  { %v930_v23 = vpop.eup %929 }
 0x2c1   :  { %v830_v24 = vmul.f32 %v930_v23, %v828_v22  ;;  %v854_v25 = vpop.xlane.xlu0 %853 }
 0x2c2   :  { %v841_v26 = vpop.xlane.xlu2 %840  ;;  %931 = vrcp.f32 %v854_v25 }
 0x2c3   :  { %v831_v27 = vsub.f32 2.0, %v830_v24  ;;  %933 = vrcp.f32 %v841_v26 }
 0x2c5   :  { %v832_v28 = vmul.f32 %v930_v23, %v831_v27 }
 0x2c7   :  { %v833_v29 = vmul.f32 %v922_v30, %v832_v28 }
 0x2c8   :  { %v932_v32 = vpop.eup %931 }
 0x2c9   :  { %v934_v33 = vpop.eup %933  ;;  %834 = vst [vmem:[#allocation12 + $0x10] sm:$0xff] %v833_v29  ;;  %v856_v34 = vmul.f32 %v932_v32, %v854_v25 }
 0x2ca   :  { %v843_v35 = vmul.f32 %v934_v33, %v841_v26 }
 0x2cb   :  { %v857_v36 = vsub.f32 2.0, %v856_v34 }
 0x2cc   :  { %v844_v37 = vsub.f32 2.0, %v843_v35 }
 0x2cd   :  { %v858_v38 = vmul.f32 %v932_v32, %v857_v36 }
 0x2ce   :  { %v845_v39 = vmul.f32 %v934_v33, %v844_v37 }
 0x2cf   :  { %v859_v40 = vmul.f32 %v924_v16, %v858_v38 }
 0x2d0   :  { %v846_v41 = vmul.f32 %v926_v17, %v845_v39 }
 0x2d1   :  { %860 = vst [vmem:[#allocation12 + $0x20] sm:$0xff] %v859_v40 }
 0x2d2   :  { %847 = vst [vmem:[#allocation12 + $0x18] sm:$0xff] %v846_v41 }
 0x2d3   :  { %882 = dma.vmem_to_hbm [thread:$0]  %s878_s16, 640, %s880_s1, [#allocation13]  }
 0x2d4   :  { %1109 = dma.done.wait [#allocation4], 640  }
 0x2d5   :  { %1110 = vsyncadd [#allocation4], 4294966656 }
 0x2d6   :  { %1111 = dma.done.wait [#allocation13], 640  }
 0x2d7   :  { %1112 = vsyncadd [#allocation13], 4294966656 }
 0x2d8   :  { %891 = vsyncpa [#allocation3], 1 }
 0x2d9   :  { %892 = vsyncpa [#allocation6], 1 }
 0x2da   :  { %893 = vsyncpa [#allocation9], 1 }
 0x2db   :  { %894 = vsyncpa [#allocation4], 1 }
 0x2dc   :  { %895 = vsyncpa [#allocation13], 1 }

</bundles_post_ra>
